<compile_context>
chip_gen: v5e
topology: v5e:2x2
jax: 0.10.0
libtpu: 0.0.40
codegen_flags: <defaults>
</compile_context>

<pallas_src>
import jax
import jax.numpy as jnp
from jax.experimental import pallas as pl
from jax.experimental.pallas import tpu as pltpu


# --------------------------------------------------------------------------- kernel

def _make_kernel(apply_sigmoid: bool):
    def kernel(x_ref, w_ref, b_ref, o_ref):
        # x_ref: (TB, D) VMEM (native dtype), w_ref: (D, 1) VMEM (resident),
        # b_ref: (1,) SMEM, o_ref: (TB, 1) VMEM f32.
        y = jnp.dot(x_ref[...], w_ref[...],
                    preferred_element_type=jnp.float32)      # MXU, f32 accumulate
        y = y + b_ref[0]
        if apply_sigmoid:
            y = jax.nn.sigmoid(y)                            # EUP, fused predict path
        o_ref[...] = y
    return kernel


# --------------------------------------------------------------------------- sizing

def _round_up(n, m):
    return ((n + m - 1) // m) * m


def _vmem_budget():
    """(per-input-buffer byte target, vmem_limit_bytes) by generation."""
    try:
        cap = pltpu.get_tpu_info().vmem_capacity_bytes
    except Exception:
        cap = 64 * 1024 * 1024
    if cap <= 80 * 1024 * 1024:                    # v7x-class: 64 MiB per TC
        return 6 * 1024 * 1024, 48 * 1024 * 1024
    return 12 * 1024 * 1024, 64 * 1024 * 1024      # v5e / v6e: 128 MiB


def _pick_tile_rows(B, D, itemsize):
    """Rows per batch tile: multiple of 128, sized by bytes (double-buffered input),
    and capped so large batches get >= 2 grid steps (megacore on v7x)."""
    buf_bytes, vmem_limit = _vmem_budget()
    lanes_d = max(_round_up(D, 128), 128)                      # D pads to lane multiple
    max_rows = max(128, (buf_bytes // (itemsize * lanes_d)) // 128 * 128)
    b_rounded = max(128, _round_up(B, 128))
    tb = min(max_rows, b_rounded)
    if B >= 256:                                               # guarantee >= 2 grid steps
        half = max(128, _round_up((b_rounded + 1) // 2, 128))
        tb = min(tb, half)
    return tb, vmem_limit


# --------------------------------------------------------------------------- wrapper

def _loglinear_pallas(x, weight, bias, *, apply_sigmoid, force_pallas=False):
    B, D = x.shape

    # Stream narrow float dtypes natively; only odd dtypes get upcast (tiny arrays
    # like the weight are cast for free).
    if x.dtype in (jnp.dtype(jnp.bfloat16), jnp.dtype(jnp.float32)):
        compute_dtype = x.dtype
    else:
        compute_dtype = jnp.float32
        x = x.astype(compute_dtype)
    itemsize = jnp.dtype(compute_dtype).itemsize

    w = weight.astype(compute_dtype).reshape(D, 1)   # (D, 1) MXU column, stays resident
    b = bias.astype(jnp.float32).reshape(1)          # (1,) SMEM scalar

    # Small-problem bypass: launch + row padding would dominate nanosecond math.
    if (not force_pallas) and B * D * itemsize < (1 << 20):
        y = jnp.dot(x, w, preferred_element_type=jnp.float32)[:, 0] + b[0]
        return jax.nn.sigmoid(y) if apply_sigmoid else y

    TB, vmem_limit = _pick_tile_rows(B, D, itemsize)
    num_tiles = pl.cdiv(B, TB)

    cost = pl.CostEstimate(
        flops=2 * B * D,
        transcendentals=B if apply_sigmoid else 0,
        bytes_accessed=B * D * itemsize + D * itemsize + 4 + B * 4,
    )

    out = pl.pallas_call(
        _make_kernel(apply_sigmoid),
        out_shape=jax.ShapeDtypeStruct((B, 1), jnp.float32),
        grid_spec=pltpu.PrefetchScalarGridSpec(
            num_scalar_prefetch=0,
            grid=(num_tiles,),
            in_specs=[
                pl.BlockSpec((TB, D), lambda i: (i, 0)),            # batch-tiled, D unsplit
                pl.BlockSpec((D, 1), lambda i: (0, 0)),             # resident weight column
                pl.BlockSpec(memory_space=pltpu.MemorySpace.SMEM),  # bias scalar in SMEM
            ],
            out_specs=pl.BlockSpec((TB, 1), lambda i: (i, 0)),      # ragged last tile OK
        ),
        compiler_params=pltpu.CompilerParams(
            dimension_semantics=("parallel",),                      # megacore on v7x
            vmem_limit_bytes=vmem_limit,
        ),
        cost_estimate=cost,
    )(x, w, b)

    return out[:, 0]


def loglinear_forward(x, weight, bias, *, force_pallas=False):
    """Pallas equivalent of LogLinear.forward: linear(x).squeeze()."""
    return jnp.squeeze(
        _loglinear_pallas(x, weight, bias, apply_sigmoid=False, force_pallas=force_pallas)
    )


def loglinear_predict(x, weight, bias, *, force_pallas=False):
    """Pallas equivalent of LogLinear.predict: sigmoid fused into the kernel."""
    return jnp.squeeze(
        _loglinear_pallas(x, weight, bias, apply_sigmoid=True, force_pallas=force_pallas)
    )


# --------------------------------------------------------------------------- test

if __name__ == "__main__":
    key = jax.random.PRNGKey(0)
    k_x, k_w, k_b, k_x2, k_x3 = jax.random.split(key, 5)

    # Small shapes matching the module (B=8 sentences, embedding_dim=32).
    batch, embedding_dim = 8, 32
    x = jax.random.normal(k_x, (batch, embedding_dim), dtype=jnp.float32)
    bound = 1.0 / (embedding_dim ** 0.5)
    weight = jax.random.uniform(k_w, (1, embedding_dim), jnp.float32, -bound, bound)
    bias = jax.random.uniform(k_b, (1,), jnp.float32, -bound, bound)

    ref = jnp.dot(x, weight.reshape(-1, 1), preferred_element_type=jnp.float32)[:, 0] + bias[0]

    # Force the Pallas path so the kernel itself is exercised at the small shape.
    out = jax.block_until_ready(loglinear_forward(x, weight, bias, force_pallas=True))
    assert out.shape == (batch,)
    assert jnp.allclose(out, ref, atol=1e-5, rtol=1e-5)

    pred = jax.block_until_ready(loglinear_predict(x, weight, bias, force_pallas=True))
    assert pred.shape == (batch,)
    assert jnp.allclose(pred, jax.nn.sigmoid(ref), atol=1e-5, rtol=1e-5)

    # Default (auto) path for the tiny problem uses the XLA bypass; must still match.
    out_bypass = jax.block_until_ready(loglinear_forward(x, weight, bias))
    assert jnp.allclose(out_bypass, ref, atol=1e-5, rtol=1e-5)

    # Larger f32 problem: multi-tile pipelined path (grid >= 2), no wrapper pad.
    b2, d2 = 4000, 256                      # deliberately not a multiple of 128
    x2 = jax.random.normal(k_x2, (b2, d2), dtype=jnp.float32)
    w2 = jax.random.uniform(k_w, (1, d2), jnp.float32, -0.0625, 0.0625)
    out2 = jax.block_until_ready(loglinear_forward(x2, w2, bias))
    ref2 = jnp.dot(x2, w2.reshape(-1, 1), preferred_element_type=jnp.float32)[:, 0] + bias[0]
    assert out2.shape == (b2,)
    assert jnp.allclose(out2, ref2, atol=1e-4, rtol=1e-4)

    # bf16 activations streamed natively (half the HBM bytes), f32 MXU accumulation.
    x3 = jax.random.normal(k_x3, (2048, d2), dtype=jnp.float32).astype(jnp.bfloat16)
    out3 = jax.block_until_ready(loglinear_predict(x3, w2, bias))
    ref3 = jax.nn.sigmoid(
        jnp.dot(x3.astype(jnp.float32), w2.astype(jnp.bfloat16).astype(jnp.float32).reshape(-1, 1))[:, 0]
        + bias[0]
    )
    assert out3.shape == (2048,)
    assert jnp.allclose(out3, ref3, atol=1e-2, rtol=1e-2)

    print("KERNEL_OK")
</pallas_src>

<mosaic_0001>
module attributes {stable_mosaic.version = 11 : i64} {
  func.func @kernel(%arg0: i32, %arg1: memref<128x32xf32, #tpu.memory_space<vmem>>, %arg2: memref<32x1xf32, #tpu.memory_space<vmem>>, %arg3: memref<1xf32, #tpu.memory_space<smem>>, %arg4: memref<128x1xf32, #tpu.memory_space<vmem>>) attributes {dimension_semantics = [#tpu.dimension_semantics<parallel>], iteration_bounds = array<i64: 1>, scalar_prefetch = 0 : i64, scratch_operands = 0 : i64, tpu.core_type = #tpu.core_type<tc>, window_params = [{transform_indices = @transform_0, window_bounds = array<i64: 128, 32>}, {pipeline_mode = #tpu.pipeline_mode<synchronous>, transform_indices = @transform_1, window_bounds = array<i64: 32, 1>}, {transform_indices = @transform_2, window_bounds = array<i64: 1>}, {transform_indices = @transform_3, window_bounds = array<i64: 128, 1>}]} {
    %c0 = arith.constant 0 : index
    %c0_0 = arith.constant 0 : index
    %0 = vector.load %arg1[%c0, %c0_0] : memref<128x32xf32, #tpu.memory_space<vmem>>, vector<128x32xf32>
    %c0_1 = arith.constant 0 : index
    %c0_2 = arith.constant 0 : index
    %1 = vector.load %arg2[%c0_1, %c0_2] : memref<32x1xf32, #tpu.memory_space<vmem>>, vector<32x1xf32>
    %cst = arith.constant dense<0.000000e+00> : vector<128x1xf32>
    %2 = tpu.matmul %0, %1, %cst {dimension_numbers = #tpu.dot_dimension_numbers<[1], [0], [0], [1], [0, 0, 1, 1], [], []>} : vector<128x32xf32>, vector<32x1xf32>, vector<128x1xf32> -> vector<128x1xf32>
    %c0_3 = arith.constant 0 : index
    %3 = memref.load %arg3[%c0_3] : memref<1xf32, #tpu.memory_space<smem>>
    %4 = vector.broadcast %3 : f32 to vector<128x1xf32>
    %5 = arith.addf %2, %4 : vector<128x1xf32>
    %c0_4 = arith.constant 0 : index
    %c0_5 = arith.constant 0 : index
    %6 = vector.load %arg4[%c0_4, %c0_5] : memref<128x1xf32, #tpu.memory_space<vmem>>, vector<128x1xf32>
    tpu.vector_store %arg4[%c0_4, %c0_5], %5 {strides = array<i32>} : memref<128x1xf32, #tpu.memory_space<vmem>>, vector<128x1xf32>,
    return
  }
  func.func @transform_0(%arg0: i32) -> (i32, i32) {
    %c0_i32 = arith.constant 0 : i32
    %c0_i32_0 = arith.constant 0 : i32
    return %arg0, %c0_i32 : i32, i32
  }
  func.func @transform_1(%arg0: i32) -> (i32, i32) {
    %c0_i32 = arith.constant 0 : i32
    %c0_i32_0 = arith.constant 0 : i32
    %c0_i32_1 = arith.constant 0 : i32
    return %c0_i32, %c0_i32_0 : i32, i32
  }
  func.func @transform_2(%arg0: i32) -> i32 {
    %c0_i32 = arith.constant 0 : i32
    %c0_i32_0 = arith.constant 0 : i32
    return %c0_i32 : i32
  }
  func.func @transform_3(%arg0: i32) -> (i32, i32) {
    %c0_i32 = arith.constant 0 : i32
    %c0_i32_0 = arith.constant 0 : i32
    return %arg0, %c0_i32 : i32, i32
  }
}

</mosaic_0001>

<bundles_post_ra>
// kernel: tpu_custom_call.1
= control target key start
LH: loop header
LB: loop body
LE: loop exit
PB: predicated region body
PF: predicated region fallthrough
CT: control target
= control target key end

     0   :  { %vm37_vm0 = vcmask 261120   ;;  %vm151_vm1 = vcmask 7168   ;;  %s339_s0 = inlined_call_operand.vmem [shape: f32[8,32], index: 0, kind: input, shape index: {}]   ;;  %s340_s1 = inlined_call_operand.vmem [shape: f32[32,1], index: 1, kind: input, shape index: {}]   ;;  %s341_s2 = inlined_call_operand.<no memory space> [shape: f32[1], index: 2, kind: input, shape index: {}]   ;;  %s342_s3 = inlined_call_operand.vmem [shape: f32[8,1], index: 3, kind: output, shape index: {}]  }
   0x1   :  { %v34_v0 = vld [vmem:[%s340_s1 + $0x18] sm:$0xff]  ;;  %v33_v1 = vld [vmem:[%s340_s1 + $0x10] sm:$0xff]  ;;  %v32_v2 = vld [vmem:[%s340_s1 + $0x8] sm:$0xff]  ;;  %v36_v20 = vstv %s341_s2 }
   0x2   :  { %226 = vmatpush.msra.mxu2 %v34_v0  ;;  %227 = vmatpush.msra.mxu3 %v34_v0  ;;  %v31_v3 = vld [vmem:[%s340_s1] sm:$0xff]  ;;  %v24_v8 = vld [vmem:[%s339_s0 + $0x48] sm:$0xff]  ;;  %v25_v12 = vld [vmem:[%s339_s0 + $0x50] sm:$0xff] }
   0x3   :  { %98 = vmatpush.msra.mxu0 %v34_v0  ;;  %225 = vmatpush.msra.mxu1 %v34_v0  ;;  %v23_v4 = vld [vmem:[%s339_s0 + $0x40] sm:$0xff]  ;;  %v28_v9 = vld [vmem:[%s339_s0 + $0x68] sm:$0xff]  ;;  %v29_v13 = vld [vmem:[%s339_s0 + $0x70] sm:$0xff] }
   0x4   :  { %229 = vmatpush.msra.mxu2 %v33_v1  ;;  %230 = vmatpush.msra.mxu3 %v33_v1  ;;  %v27_v5 = vld [vmem:[%s339_s0 + $0x60] sm:$0xff]  ;;  %v16_v10 = vld [vmem:[%s339_s0 + $0x8] sm:$0xff]  ;;  %v17_v14 = vld [vmem:[%s339_s0 + $0x10] sm:$0xff] }
   0x5   :  { %99 = vmatpush.msra.mxu0 %v33_v1  ;;  %228 = vmatpush.msra.mxu1 %v33_v1  ;;  %v15_v6 = vld [vmem:[%s339_s0] sm:$0xff]  ;;  %v20_v11 = vld [vmem:[%s339_s0 + $0x28] sm:$0xff]  ;;  %v21_v15 = vld [vmem:[%s339_s0 + $0x30] sm:$0xff] }
   0x6   :  { %232 = vmatpush.msra.mxu2 %v32_v2  ;;  %233 = vmatpush.msra.mxu3 %v32_v2  ;;  %v19_v7 = vld [vmem:[%s339_s0 + $0x20] sm:$0xff]  ;;  %v26_v16 = vld [vmem:[%s339_s0 + $0x58] sm:$0xff] }
   0x7   :  { %100 = vmatpush.msra.mxu0 %v32_v2  ;;  %231 = vmatpush.msra.mxu1 %v32_v2  ;;  %v30_v17 = vld [vmem:[%s339_s0 + $0x78] sm:$0xff] }
   0x8   :  { %235 = vmatpush.msra.mxu2 %v31_v3  ;;  %236 = vmatpush.msra.mxu3 %v31_v3  ;;  %v18_v18 = vld [vmem:[%s339_s0 + $0x18] sm:$0xff] }
   0x9   :  { %217 = vmatmul.msk.f32.vlgmr.msra.gmra.mxu2 %vm37_vm0, %v23_v4  ;;  %221 = vmatmul.msk.f32.vlgmr.msra.gmra.mxu3 %vm37_vm0, %v27_v5  ;;  %v22_v19 = vld [vmem:[%s339_s0 + $0x38] sm:$0xff] }
   0xa   :  { %101 = vmatpush.msra.mxu0 %v31_v3  ;;  %234 = vmatpush.msra.mxu1 %v31_v3 }
   0xb   :  { %209 = vmatmul.msk.f32.vlgmr.msra.gmra.mxu0 %vm37_vm0, %v15_v6  ;;  %213 = vmatmul.msk.f32.vlgmr.msra.gmra.mxu1 %vm37_vm0, %v19_v7 }
  0x11   :  { %218 = vmatmul.msk.f32.gmra.mxu2 %vm37_vm0, %v24_v8  ;;  %222 = vmatmul.msk.f32.gmra.mxu3 %vm37_vm0, %v28_v9 }
  0x13   :  { %210 = vmatmul.msk.f32.gmra.mxu0 %vm37_vm0, %v16_v10  ;;  %214 = vmatmul.msk.f32.gmra.mxu1 %vm37_vm0, %v20_v11 }
  0x19   :  { %219 = vmatmul.msk.f32.gmra.mxu2 %vm37_vm0, %v25_v12  ;;  %223 = vmatmul.msk.f32.gmra.mxu3 %vm37_vm0, %v29_v13 }
  0x1b   :  { %211 = vmatmul.msk.f32.gmra.mxu0 %vm37_vm0, %v17_v14  ;;  %215 = vmatmul.msk.f32.gmra.mxu1 %vm37_vm0, %v21_v15 }
  0x21   :  { %220 = vmatmul.msk.f32.gmra.mxu2 %vm37_vm0, %v26_v16  ;;  %224 = vmatmul.msk.f32.gmra.mxu3 %vm37_vm0, %v30_v17 }
  0x23   :  { %212 = vmatmul.msk.f32.gmra.mxu0 %vm37_vm0, %v18_v18  ;;  %216 = vmatmul.msk.f32.gmra.mxu1 %vm37_vm0, %v22_v19 }
  0x88   :  { %v103_v21 = vpop.f32.mrf.mxu0  ;;  %v115_v22 = vpop.f32.mrf.mxu1 }
  0x89   :  { %v104_v23 = vadd.f32 %v103_v21, %v36_v20 }
  0x8b   :  { %152 = vst.msk [vmem:[#allocation3] sm:$0xff] %vm151_vm1, %v104_v23 }
  0x8c   :  { %v127_v24 = vpop.f32.mrf.mxu2  ;;  %v139_v25 = vpop.f32.mrf.mxu3 }
  0x90   :  { %v106_v26 = vpop.f32.mrf.mxu0  ;;  %v118_v27 = vpop.f32.mrf.mxu1 }
  0x92   :  { %v198_v28 = vld [vmem:[#allocation3] sm:$0xff] }
  0x93   :  { %199 = vst [vmem:[%s342_s3] sm:$0xff] %v198_v28 }
  0x94   :  { %v130_v29 = vpop.f32.mrf.mxu2  ;;  %v142_v30 = vpop.f32.mrf.mxu3 }
  0x98   :  { %v109_v31 = vpop.f32.mrf.mxu0  ;;  %v121_v32 = vpop.f32.mrf.mxu1 }
  0x9c   :  { %v133_v33 = vpop.f32.mrf.mxu2  ;;  %v145_v34 = vpop.f32.mrf.mxu3 }
  0xa0   :  { %v112_v35 = vpop.f32.mrf.mxu0  ;;  %v124_v36 = vpop.f32.mrf.mxu1 }
  0xa4   :  { %v136_v37 = vpop.f32.mrf.mxu2  ;;  %v148_v38 = vpop.f32.mrf.mxu3 }

</bundles_post_ra>
